<compile_context>
chip_gen: v5e
topology: v5e:2x2
jax: 0.10.0
libtpu: 0.0.40
codegen_flags: <defaults>
</compile_context>

<pallas_src>
import functools

import jax
import jax.numpy as jnp
from jax.experimental import pallas as pl
from jax.experimental.pallas import tpu as pltpu


_LANES = 128
_SUBLANES = 8


def _round_up(x, m):
    return (x + m - 1) // m * m


def cann_kernel(w_ref, wout_ref, f_ref, psi_ref):
    """w_ref:    SMEM f32[4]           pruned w, pre-scaled by 0.01
       wout_ref: SMEM f32[8]           pruned output_layer.weight (flattened)
       f_ref:    VMEM f32[4, TR, 128]  planar SoA: [F00, F01, F10, F11]
       psi_ref:  VMEM f32[TR, 128]     strain-energy output"""
    f00 = f_ref[0]          # (TR, 128) dense tiles
    f01 = f_ref[1]
    f10 = f_ref[2]
    f11 = f_ref[3]

    # C = F^T F ; I1 = trace(C) = ||F||_F^2 ; J = det(F)
    I1 = f00 * f00 + f01 * f01 + f10 * f10 + f11 * f11
    J = f00 * f11 - f01 * f10

    a = I1 - 2.0            # feature 0: I1 - 2
    b = J - 1.0             # feature 1: J - 1
    a2 = a * a              # feature 2: (I1 - 2)^2
    b2 = b * b              # feature 3: (J - 1)^2

    # out_exp_i = clamp(exp(0.01 * w_i * out_i) - 1, max=100)  (0.01 folded into w_ref)
    # TODO(synk): optionally gate each exp with pl.when(w_ref[i] != 0) to skip EUP
    # work for pruned weights; neutral for the default (unpruned) parameters.
    e0 = jnp.minimum(jnp.exp(w_ref[0] * a) - 1.0, 100.0)
    e1 = jnp.minimum(jnp.exp(w_ref[1] * b) - 1.0, 100.0)
    e2 = jnp.minimum(jnp.exp(w_ref[2] * a2) - 1.0, 100.0)
    e3 = jnp.minimum(jnp.exp(w_ref[3] * b2) - 1.0, 100.0)

    # 8 -> 1 bias-free linear layer over [a, b, a^2, b^2, e0, e1, e2, e3],
    # kept as a factored VPU FMA chain (no MXU work in this kernel).
    psi_ref[...] = (a * (wout_ref[0] + wout_ref[2] * a)
                    + b * (wout_ref[1] + wout_ref[3] * b)
                    + wout_ref[4] * e0 + wout_ref[5] * e1
                    + wout_ref[6] * e2 + wout_ref[7] * e3)


@functools.partial(jax.jit, static_argnames=("max_tile_rows", "min_tiles"))
def cann_forward(F, w, out_weight, *, max_tile_rows=1024, min_tiles=2):
    """F: (N, 2, 2) float32; w: (4,) float32; out_weight: (1, 8) float32."""
    N = F.shape[0]

    # --- parameter pruning glue (parameters_to_vector order: w, output_layer.weight) ---
    vec = jnp.concatenate(
        [w.reshape(-1), out_weight.reshape(-1)]).astype(jnp.float32)
    thr = jnp.max(vec) * 0.001
    vec = jnp.where(vec < thr, 0.0, vec)
    w_p = vec[:4] * 0.01           # fold the 0.01 of exp(0.01 * w * feat)
    wout_p = vec[4:12]

    # --- tiling: batch axis spans (rows = sublanes) x (128 lanes) -----------------
    R0 = _round_up(pl.cdiv(N, _LANES), _SUBLANES)      # rows needed, 8-aligned
    num_tiles = pl.cdiv(R0, max_tile_rows)             # cap rows per grid step
    if R0 >= min_tiles * _SUBLANES:
        num_tiles = max(num_tiles, min_tiles)          # >=2 tiles for v7x megacore
    TR = _round_up(pl.cdiv(R0, num_tiles), _SUBLANES)  # rows per tile (mult. of 8)
    num_tiles = pl.cdiv(R0, TR)
    R = num_tiles * TR                                 # padded rows (waste <= 8*num_tiles)
    n_pad = R * _LANES

    # Planar SoA layout (4, R, 128) with planes [F00, F01, F10, F11].
    # TODO(synk): ideally the producer of F emits this planar layout directly; the
    # transpose below is one extra HBM read+write pass over F for this mem-bound kernel.
    f_t = jnp.transpose(F.reshape(N, 4).astype(jnp.float32))      # (4, N)
    if n_pad != N:
        # Zero padding is safe: padded lanes produce bounded junk that is sliced off.
        f_t = jnp.pad(f_t, ((0, 0), (0, n_pad - N)))
    f_t = f_t.reshape(4, R, _LANES)

    psi = pl.pallas_call(
        cann_kernel,
        out_shape=jax.ShapeDtypeStruct((R, _LANES), jnp.float32),
        grid=(num_tiles,),
        in_specs=[
            pl.BlockSpec(memory_space=pltpu.MemorySpace.SMEM),       # 0.01 * w (pruned)
            pl.BlockSpec(memory_space=pltpu.MemorySpace.SMEM),       # output weights (pruned)
            pl.BlockSpec((4, TR, _LANES), lambda i: (0, i, 0)),      # F planes, dense tiles
        ],
        out_specs=pl.BlockSpec((TR, _LANES), lambda i: (i, 0)),
        compiler_params=pltpu.CompilerParams(
            dimension_semantics=("parallel",)),                      # megacore split on v7x
    )(w_p, wout_p, f_t)

    return psi.reshape(-1)[:N]     # squeeze(dim=1) -> (N,)


def _reference(F, w, out_weight):
    C = jnp.einsum('nij,nik->njk', F, F)            # F^T F
    I1 = jnp.trace(C, axis1=-2, axis2=-1)
    J = jnp.linalg.det(F)
    vec = jnp.concatenate([w.reshape(-1), out_weight.reshape(-1)])
    thr = jnp.max(vec) * 0.001
    vec = jnp.where(vec < thr, 0.0, vec)
    w_p = vec[:4]
    wout_p = vec[4:12].reshape(1, 8)
    out = jnp.stack([I1 - 2.0, J - 1.0], axis=1)
    out = jnp.concatenate([out, out ** 2], axis=1)
    out_exp = jnp.minimum(jnp.exp(0.01 * w_p[None, :] * out) - 1.0, 100.0)
    out_full = jnp.concatenate([out, out_exp], axis=1)
    return (out_full @ wout_p.T)[:, 0]


if __name__ == "__main__":
    key = jax.random.PRNGKey(0)

    # Deterministic parameter init (matches module __init__):
    #   output_layer.weight ~ Normal(mean=10, std=0.0) -> exactly 10.0, shape (1, 8)
    #   w = ones(4)
    out_weight = jnp.full((1, 8), 10.0, dtype=jnp.float32)
    w = jnp.ones((4,), dtype=jnp.float32)

    # Small batch of 2x2 deformation gradients: F = I + small perturbation.
    N = 8
    noise = 0.1 * jax.random.normal(key, (N, 2, 2), dtype=jnp.float32)
    F = jnp.eye(2, dtype=jnp.float32)[None, :, :] + noise

    psi = cann_forward(F, w, out_weight)
    jax.block_until_ready(psi)
    psi_ref = _reference(F, w, out_weight)
    assert psi.shape == (N,)
    assert jnp.allclose(psi, psi_ref, rtol=1e-5, atol=1e-5), (psi, psi_ref)

    # Second check exercising the multi-tile grid + sublane-granule padding path.
    N2 = 2500                                   # R0=24 rows; max_tile_rows=8 -> 3 tiles
    noise2 = 0.1 * jax.random.normal(jax.random.PRNGKey(1), (N2, 2, 2),
                                     dtype=jnp.float32)
    F2 = jnp.eye(2, dtype=jnp.float32)[None, :, :] + noise2
    psi2 = cann_forward(F2, w, out_weight, max_tile_rows=8)
    jax.block_until_ready(psi2)
    psi2_ref = _reference(F2, w, out_weight)
    assert psi2.shape == (N2,)
    assert jnp.allclose(psi2, psi2_ref, rtol=1e-5, atol=1e-5)

    print("KERNEL_OK")
</pallas_src>

<mosaic_0001>
module attributes {stable_mosaic.version = 11 : i64} {
  func.func @cann_kernel(%arg0: i32, %arg1: memref<4xf32, #tpu.memory_space<smem>>, %arg2: memref<8xf32, #tpu.memory_space<smem>>, %arg3: memref<4x8x128xf32, #tpu.memory_space<vmem>>, %arg4: memref<8x128xf32, #tpu.memory_space<vmem>>) attributes {dimension_semantics = [#tpu.dimension_semantics<parallel>], iteration_bounds = array<i64: 1>, scalar_prefetch = 0 : i64, scratch_operands = 0 : i64, tpu.core_type = #tpu.core_type<tc>, window_params = [{transform_indices = @transform_0, window_bounds = array<i64: 4>}, {transform_indices = @transform_1, window_bounds = array<i64: 8>}, {transform_indices = @transform_2, window_bounds = array<i64: 4, 8, 128>}, {transform_indices = @transform_3, window_bounds = array<i64: 8, 128>}]} {
    %c0 = arith.constant 0 : index
    %c0_0 = arith.constant 0 : index
    %c0_1 = arith.constant 0 : index
    %0 = vector.load %arg3[%c0, %c0_0, %c0_1] : memref<4x8x128xf32, #tpu.memory_space<vmem>>, vector<1x8x128xf32>
    %1 = vector.shape_cast %0 : vector<1x8x128xf32> to vector<8x128xf32>
    %c1 = arith.constant 1 : index
    %c0_2 = arith.constant 0 : index
    %c0_3 = arith.constant 0 : index
    %2 = vector.load %arg3[%c1, %c0_2, %c0_3] : memref<4x8x128xf32, #tpu.memory_space<vmem>>, vector<1x8x128xf32>
    %3 = vector.shape_cast %2 : vector<1x8x128xf32> to vector<8x128xf32>
    %c2 = arith.constant 2 : index
    %c0_4 = arith.constant 0 : index
    %c0_5 = arith.constant 0 : index
    %4 = vector.load %arg3[%c2, %c0_4, %c0_5] : memref<4x8x128xf32, #tpu.memory_space<vmem>>, vector<1x8x128xf32>
    %5 = vector.shape_cast %4 : vector<1x8x128xf32> to vector<8x128xf32>
    %c3 = arith.constant 3 : index
    %c0_6 = arith.constant 0 : index
    %c0_7 = arith.constant 0 : index
    %6 = vector.load %arg3[%c3, %c0_6, %c0_7] : memref<4x8x128xf32, #tpu.memory_space<vmem>>, vector<1x8x128xf32>
    %7 = vector.shape_cast %6 : vector<1x8x128xf32> to vector<8x128xf32>
    %8 = arith.mulf %1, %1 : vector<8x128xf32>
    %9 = arith.mulf %3, %3 : vector<8x128xf32>
    %10 = arith.addf %8, %9 : vector<8x128xf32>
    %11 = arith.mulf %5, %5 : vector<8x128xf32>
    %12 = arith.addf %10, %11 : vector<8x128xf32>
    %13 = arith.mulf %7, %7 : vector<8x128xf32>
    %14 = arith.addf %12, %13 : vector<8x128xf32>
    %15 = arith.mulf %1, %7 : vector<8x128xf32>
    %16 = arith.mulf %3, %5 : vector<8x128xf32>
    %17 = arith.subf %15, %16 : vector<8x128xf32>
    %cst = arith.constant 2.000000e+00 : f32
    %18 = vector.broadcast %cst : f32 to vector<8x128xf32>
    %19 = arith.subf %14, %18 : vector<8x128xf32>
    %cst_8 = arith.constant 1.000000e+00 : f32
    %20 = vector.broadcast %cst_8 : f32 to vector<8x128xf32>
    %21 = arith.subf %17, %20 : vector<8x128xf32>
    %22 = arith.mulf %19, %19 : vector<8x128xf32>
    %23 = arith.mulf %21, %21 : vector<8x128xf32>
    %c0_9 = arith.constant 0 : index
    %24 = memref.load %arg1[%c0_9] : memref<4xf32, #tpu.memory_space<smem>>
    %25 = vector.broadcast %24 : f32 to vector<8x128xf32>
    %26 = arith.mulf %25, %19 : vector<8x128xf32>
    %27 = math.exp %26 : vector<8x128xf32>
    %cst_10 = arith.constant 1.000000e+00 : f32
    %28 = vector.broadcast %cst_10 : f32 to vector<8x128xf32>
    %29 = arith.subf %27, %28 : vector<8x128xf32>
    %cst_11 = arith.constant 1.000000e+02 : f32
    %30 = vector.broadcast %cst_11 : f32 to vector<8x128xf32>
    %31 = arith.minimumf %29, %30 : vector<8x128xf32>
    %c1_12 = arith.constant 1 : index
    %32 = memref.load %arg1[%c1_12] : memref<4xf32, #tpu.memory_space<smem>>
    %33 = vector.broadcast %32 : f32 to vector<8x128xf32>
    %34 = arith.mulf %33, %21 : vector<8x128xf32>
    %35 = math.exp %34 : vector<8x128xf32>
    %cst_13 = arith.constant 1.000000e+00 : f32
    %36 = vector.broadcast %cst_13 : f32 to vector<8x128xf32>
    %37 = arith.subf %35, %36 : vector<8x128xf32>
    %cst_14 = arith.constant 1.000000e+02 : f32
    %38 = vector.broadcast %cst_14 : f32 to vector<8x128xf32>
    %39 = arith.minimumf %37, %38 : vector<8x128xf32>
    %c2_15 = arith.constant 2 : index
    %40 = memref.load %arg1[%c2_15] : memref<4xf32, #tpu.memory_space<smem>>
    %41 = vector.broadcast %40 : f32 to vector<8x128xf32>
    %42 = arith.mulf %41, %22 : vector<8x128xf32>
    %43 = math.exp %42 : vector<8x128xf32>
    %cst_16 = arith.constant 1.000000e+00 : f32
    %44 = vector.broadcast %cst_16 : f32 to vector<8x128xf32>
    %45 = arith.subf %43, %44 : vector<8x128xf32>
    %cst_17 = arith.constant 1.000000e+02 : f32
    %46 = vector.broadcast %cst_17 : f32 to vector<8x128xf32>
    %47 = arith.minimumf %45, %46 : vector<8x128xf32>
    %c3_18 = arith.constant 3 : index
    %48 = memref.load %arg1[%c3_18] : memref<4xf32, #tpu.memory_space<smem>>
    %49 = vector.broadcast %48 : f32 to vector<8x128xf32>
    %50 = arith.mulf %49, %23 : vector<8x128xf32>
    %51 = math.exp %50 : vector<8x128xf32>
    %cst_19 = arith.constant 1.000000e+00 : f32
    %52 = vector.broadcast %cst_19 : f32 to vector<8x128xf32>
    %53 = arith.subf %51, %52 : vector<8x128xf32>
    %cst_20 = arith.constant 1.000000e+02 : f32
    %54 = vector.broadcast %cst_20 : f32 to vector<8x128xf32>
    %55 = arith.minimumf %53, %54 : vector<8x128xf32>
    %c0_21 = arith.constant 0 : index
    %56 = memref.load %arg2[%c0_21] : memref<8xf32, #tpu.memory_space<smem>>
    %c2_22 = arith.constant 2 : index
    %57 = memref.load %arg2[%c2_22] : memref<8xf32, #tpu.memory_space<smem>>
    %58 = vector.broadcast %57 : f32 to vector<8x128xf32>
    %59 = arith.mulf %58, %19 : vector<8x128xf32>
    %60 = vector.broadcast %56 : f32 to vector<8x128xf32>
    %61 = arith.addf %60, %59 : vector<8x128xf32>
    %62 = arith.mulf %19, %61 : vector<8x128xf32>
    %c1_23 = arith.constant 1 : index
    %63 = memref.load %arg2[%c1_23] : memref<8xf32, #tpu.memory_space<smem>>
    %c3_24 = arith.constant 3 : index
    %64 = memref.load %arg2[%c3_24] : memref<8xf32, #tpu.memory_space<smem>>
    %65 = vector.broadcast %64 : f32 to vector<8x128xf32>
    %66 = arith.mulf %65, %21 : vector<8x128xf32>
    %67 = vector.broadcast %63 : f32 to vector<8x128xf32>
    %68 = arith.addf %67, %66 : vector<8x128xf32>
    %69 = arith.mulf %21, %68 : vector<8x128xf32>
    %70 = arith.addf %62, %69 : vector<8x128xf32>
    %c4 = arith.constant 4 : index
    %71 = memref.load %arg2[%c4] : memref<8xf32, #tpu.memory_space<smem>>
    %72 = vector.broadcast %71 : f32 to vector<8x128xf32>
    %73 = arith.mulf %72, %31 : vector<8x128xf32>
    %74 = arith.addf %70, %73 : vector<8x128xf32>
    %c5 = arith.constant 5 : index
    %75 = memref.load %arg2[%c5] : memref<8xf32, #tpu.memory_space<smem>>
    %76 = vector.broadcast %75 : f32 to vector<8x128xf32>
    %77 = arith.mulf %76, %39 : vector<8x128xf32>
    %78 = arith.addf %74, %77 : vector<8x128xf32>
    %c6 = arith.constant 6 : index
    %79 = memref.load %arg2[%c6] : memref<8xf32, #tpu.memory_space<smem>>
    %80 = vector.broadcast %79 : f32 to vector<8x128xf32>
    %81 = arith.mulf %80, %47 : vector<8x128xf32>
    %82 = arith.addf %78, %81 : vector<8x128xf32>
    %c7 = arith.constant 7 : index
    %83 = memref.load %arg2[%c7] : memref<8xf32, #tpu.memory_space<smem>>
    %84 = vector.broadcast %83 : f32 to vector<8x128xf32>
    %85 = arith.mulf %84, %55 : vector<8x128xf32>
    %86 = arith.addf %82, %85 : vector<8x128xf32>
    %c0_25 = arith.constant 0 : index
    %c0_26 = arith.constant 0 : index
    %87 = vector.load %arg4[%c0_25, %c0_26] : memref<8x128xf32, #tpu.memory_space<vmem>>, vector<8x128xf32>
    tpu.vector_store %arg4[%c0_25, %c0_26], %86 {strides = array<i32>} : memref<8x128xf32, #tpu.memory_space<vmem>>, vector<8x128xf32>,
    return
  }
  func.func @transform_0(%arg0: i32) -> i32 {
    %c0_i32 = arith.constant 0 : i32
    %c0_i32_0 = arith.constant 0 : i32
    return %c0_i32 : i32
  }
  func.func @transform_1(%arg0: i32) -> i32 {
    %c0_i32 = arith.constant 0 : i32
    %c0_i32_0 = arith.constant 0 : i32
    return %c0_i32 : i32
  }
  func.func @transform_2(%arg0: i32) -> (i32, i32, i32) {
    %c0_i32 = arith.constant 0 : i32
    %c0_i32_0 = arith.constant 0 : i32
    %c0_i32_1 = arith.constant 0 : i32
    return %c0_i32, %arg0, %c0_i32_0 : i32, i32, i32
  }
  func.func @transform_3(%arg0: i32) -> (i32, i32) {
    %c0_i32 = arith.constant 0 : i32
    %c0_i32_0 = arith.constant 0 : i32
    return %arg0, %c0_i32 : i32, i32
  }
}

</mosaic_0001>

<bundles_post_ra>
// kernel: cann_forward.1
= control target key start
LH: loop header
LB: loop body
LE: loop exit
PB: predicated region body
PF: predicated region fallthrough
CT: control target
= control target key end

     0   :  { %8 = vsyncpa [#allocation3], 0  ;;  %s229_s0 = inlined_call_operand.vmem [shape: f32[4], index: 0, kind: input, shape index: {}]   ;;  %s230_s1 = inlined_call_operand.vmem [shape: f32[8], index: 1, kind: input, shape index: {}]   ;;  %s231_s2 = inlined_call_operand.vmem [shape: f32[4,8,128], index: 2, kind: input, shape index: {}]   ;;  %s232_s3 = inlined_call_operand.vmem [shape: f32[8,128], index: 3, kind: output, shape index: {}]  }
   0x1   :  { %s15_s14 = sshll.u32 %s229_s0, 4  ;;  %s16_s14 = int_to_ptr.vmem [resolvable:$true] %s15_s14 }
   0x2   :  { %9 = vsyncpa [#allocation5], 0  ;;  %s24_s17 = sshll.u32 %s230_s1, 4  ;;  %s183_s18 = smov [#allocation2]   ;;  %s25_s17 = int_to_ptr.vmem [resolvable:$true] %s24_s17 }
   0x3   :  { %18 = dma.vmem_to_smem %s16_s14, 16, %s183_s18, [#allocation3]  }
   0x4   :  { %s184_s19 = smov [#allocation4]  }
   0x5   :  { %27 = dma.vmem_to_smem %s25_s17, 16, %s184_s19, [#allocation5]  }
   0x6   :  { %179 = dma.done.wait [#allocation3], 16  }
   0x7   :  { %180 = vsyncadd [#allocation3], 4294967280 }
   0x8   :  { %181 = dma.done.wait [#allocation5], 16  }
   0x9   :  { %182 = vsyncadd [#allocation5], 4294967280 }
   0xa   :  { %38 = sfence }
   0xb   :  { %v39_v0 = vld [vmem:[%s231_s2] sm:$0xff]  ;;  %v126_v1 = vld [vmem:[%s231_s2 + $0x8] sm:$0xff]  ;;  %v127_v2 = vld [vmem:[%s231_s2 + $0x10] sm:$0xff]  ;;  %s60_s24 = sld [smem:[#allocation2]] }
   0xc   :  { %v128_v3 = vld [vmem:[%s231_s2 + $0x18] sm:$0xff]  ;;  %v46_v4 = vmul.f32 %v39_v0, %v39_v0  ;;  %v47_v5 = vmul.f32 %v126_v1, %v126_v1  ;;  %v49_v6 = vmul.f32 %v127_v2, %v127_v2  ;;  %v54_v7 = vmul.f32 %v127_v2, %v126_v1  ;;  %s132_s27 = sld [smem:[#allocation2 + $0x1]] }
   0xd   :  { %v53_v8 = vmul.f32 %v128_v3, %v39_v0  ;;  %s134_s28 = sld [smem:[#allocation2 + $0x2]]  ;;  %v51_v10 = vmul.f32 %v128_v3, %v128_v3 }
   0xe   :  { %v48_v9 = vadd.f32 %v47_v5, %v46_v4  ;;  %s136_s29 = sld [smem:[#allocation2 + $0x3]] }
   0xf   :  { %v55_v11 = vsub.f32 %v53_v8, %v54_v7  ;;  %s223_s30 = sld [smem:[#allocation4]] }
  0x10   :  { %v50_v12 = vadd.f32 %v49_v6, %v48_v9  ;;  %s138_s4 = sld [smem:[#allocation4 + $0x2]] }
  0x11   :  { %v130_v13 = vadd.f32 -1.0, %v55_v11  ;;  %s139_s5 = sld [smem:[#allocation4 + $0x1]]  ;;  %v61_v17 = vstv %s60_s24 }
  0x12   :  { %v52_v14 = vadd.f32 %v51_v10, %v50_v12  ;;  %v68_v15 = vstv %s132_s27  ;;  %s140_s2 = sld [smem:[#allocation4 + $0x3]] }
  0x13   :  { %v59_v16 = vmul.f32 %v130_v13, %v130_v13  ;;  %v69_v18 = vmul.f32 %v130_v13, %v68_v15  ;;  %v75_v22 = vstv %s134_s28  ;;  %s141_s6 = sld [smem:[#allocation4 + $0x4]] }
  0x14   :  { %v129_v19 = vadd.f32 -2.0, %v52_v14  ;;  %v82_v20 = vstv %s136_s29  ;;  %s142_s7 = sld [smem:[#allocation4 + $0x5]] }
  0x15   :  { %v70_v21 = vmul.f32 1.442695, %v69_v18  ;;  %v83_v23 = vmul.f32 %v82_v20, %v59_v16  ;;  %v92_v29 = vstv %s223_s30  ;;  %s143_s8 = sld [smem:[#allocation4 + $0x6]] }
  0x16   :  { %v58_v24 = vmul.f32 %v129_v19, %v129_v19  ;;  %v62_v25 = vmul.f32 %v129_v19, %v61_v17  ;;  %v90_v26 = vstv %s138_s4  ;;  %s144_s9 = sld [smem:[#allocation4 + $0x7]] }
  0x17   :  { %147 = vpow2.f32 %v70_v21  ;;  %v84_v27 = vmul.f32 1.442695, %v83_v23  ;;  %v91_v28 = vmul.f32 %v129_v19, %v90_v26  ;;  %v99_v33 = vstv %s139_s5 }
  0x18   :  { %v63_v30 = vmul.f32 1.442695, %v62_v25  ;;  %v76_v31 = vmul.f32 %v75_v22, %v58_v24  ;;  %v97_v32 = vstv %s140_s2 }
  0x19   :  { %149 = vpow2.f32 %v84_v27  ;;  %v98_v34 = vmul.f32 %v130_v13, %v97_v32  ;;  %v93_v36 = vadd.f32 %v92_v29, %v91_v28  ;;  %v104_v48 = vstv %s141_s6 }
  0x1a   :  { %151 = vpow2.f32 %v63_v30  ;;  %v77_v35 = vmul.f32 1.442695, %v76_v31  ;;  %v108_v49 = vstv %s142_s7 }
  0x1b   :  { %v100_v37 = vadd.f32 %v99_v33, %v98_v34  ;;  %v94_v41 = vmul.f32 %v129_v19, %v93_v36  ;;  %v112_v53 = vstv %s143_s8 }
  0x1c   :  { %153 = vpow2.f32 %v77_v35  ;;  %v116_v58 = vstv %s144_s9 }
  0x1d   :  { %v148_v38 = vpop.eup %147  ;;  %v101_v42 = vmul.f32 %v130_v13, %v100_v37 }
  0x1e   :  { %v133_v39 = vadd.f32 -1.0, %v148_v38 }
  0x1f   :  { %v150_v40 = vpop.eup %149  ;;  %v102_v52 = vadd.f32 %v101_v42, %v94_v41 }
  0x20   :  { %v152_v43 = vpop.eup %151  ;;  %v73_v45 = vmin.f32 %v133_v39, 100.0  ;;  %v137_v46 = vadd.f32 -1.0, %v150_v40 }
  0x21   :  { %v131_v44 = vadd.f32 -1.0, %v152_v43 }
  0x22   :  { %v154_v47 = vpop.eup %153  ;;  %v87_v55 = vmin.f32 %v137_v46, 100.0  ;;  %v109_v57 = vmul.f32 %v108_v49, %v73_v45 }
  0x23   :  { %v66_v50 = vmin.f32 %v131_v44, 100.0  ;;  %v135_v51 = vadd.f32 -1.0, %v154_v47 }
  0x24   :  { %v117_v62 = vmul.f32 %v116_v58, %v87_v55 }
  0x25   :  { %v80_v54 = vmin.f32 %v135_v51, 100.0  ;;  %v105_v56 = vmul.f32 %v104_v48, %v66_v50 }
  0x27   :  { %v106_v59 = vadd.f32 %v105_v56, %v102_v52  ;;  %v113_v60 = vmul.f32 %v112_v53, %v80_v54 }
  0x29   :  { %v110_v61 = vadd.f32 %v109_v57, %v106_v59 }
  0x2b   :  { %v114_v63 = vadd.f32 %v113_v60, %v110_v61 }
  0x2d   :  { %v118_v0 = vadd.f32 %v117_v62, %v114_v63 }
  0x2f   :  { %119 = vst [vmem:[%s232_s3] sm:$0xff] %v118_v0 }
  0x30   :  { %124 = vsyncpa [#allocation3], 1 }
  0x31   :  { %125 = vsyncpa [#allocation5], 1 }

</bundles_post_ra>
